<compile_context>
chip_gen: v5e
topology: v5e:2x2
jax: 0.10.0
libtpu: 0.0.40
codegen_flags: <defaults>
</compile_context>

<pallas_src>
import functools

import jax
import jax.numpy as jnp
from jax.experimental import pallas as pl
from jax.experimental.pallas import tpu as pltpu

# Module hyperparameters (from the PyTorch spec)
INPUT_SIZE = 10
HIDDEN_SIZE = 20
OUTPUT_SIZE = 1
TIME_INTERVAL = 5  # not used in forward()

# Max batch-tile (lane) width per grid step, multiple of 128.
MAX_TILE_B = 8192


def mlp_kernel(xT_ref, w1_ref, b1_ref, w2_ref, b2_ref, oT_ref):
    # xT_ref: (INPUT_SIZE, TILE_B)                    -- batch on lanes
    # w1_ref: (HIDDEN_SIZE, INPUT_SIZE)   b1_ref: (HIDDEN_SIZE, 1)
    # w2_ref: (OUTPUT_SIZE, HIDDEN_SIZE)  b2_ref: (OUTPUT_SIZE, 1)
    # oT_ref: (OUTPUT_SIZE, TILE_B)
    x = xT_ref[...]
    # fc1 + ReLU: (HIDDEN, IN) @ (IN, TILE_B) -> (HIDDEN, TILE_B), f32 accumulate.
    h = jnp.dot(w1_ref[...], x, preferred_element_type=jnp.float32) + b1_ref[...]
    h = jnp.maximum(h, 0.0)
    # fc2: (OUT, HIDDEN) @ (HIDDEN, TILE_B) -> (OUT, TILE_B); N = TILE_B keeps the
    # MXU lane-dense (no degenerate N=1 matmul).
    out = jnp.dot(w2_ref[...], h, preferred_element_type=jnp.float32) + b2_ref[...]
    oT_ref[...] = out.astype(oT_ref.dtype)


def _round_up(n, m):
    return ((n + m - 1) // m) * m


@jax.jit
def time_series_mlp_forward(x, w1, b1, w2, b2):
    """Fused fc1 -> ReLU -> fc2.

    x  : (B, INPUT_SIZE) float32
    w1 : (HIDDEN_SIZE, INPUT_SIZE)   b1 : (HIDDEN_SIZE,)   (PyTorch nn.Linear layout)
    w2 : (OUTPUT_SIZE, HIDDEN_SIZE)  b2 : (OUTPUT_SIZE,)
    returns (B, OUTPUT_SIZE) float32
    """
    batch = x.shape[0]

    # Batch becomes the lane dimension: tile in multiples of 128 lanes.
    b128 = _round_up(max(batch, 1), 128)
    tile_b = min(MAX_TILE_B, b128)
    grid_b = pl.cdiv(b128, tile_b)
    b_pad = grid_b * tile_b

    # Transpose to lane-dense layout; zero-pad batch up to the tile multiple.
    xT = jnp.zeros((INPUT_SIZE, b_pad), dtype=jnp.float32)
    xT = xT.at[:, :batch].set(x.astype(jnp.float32).T)

    b1c = b1.reshape(HIDDEN_SIZE, 1).astype(jnp.float32)
    b2c = b2.reshape(OUTPUT_SIZE, 1).astype(jnp.float32)

    cost = pl.CostEstimate(
        flops=2 * b_pad * (INPUT_SIZE * HIDDEN_SIZE + HIDDEN_SIZE * OUTPUT_SIZE),
        transcendentals=0,
        bytes_accessed=4 * (b_pad * (INPUT_SIZE + OUTPUT_SIZE)
                            + HIDDEN_SIZE * (INPUT_SIZE + 1)
                            + OUTPUT_SIZE * (HIDDEN_SIZE + 1)),
    )

    outT = pl.pallas_call(
        mlp_kernel,
        out_shape=jax.ShapeDtypeStruct((OUTPUT_SIZE, b_pad), jnp.float32),
        grid=(grid_b,),
        in_specs=[
            # Activations: tiled along the batch/lane axis (double-buffered).
            pl.BlockSpec((INPUT_SIZE, tile_b), lambda i: (0, i)),
            # Weights/biases: same block every step -> stay resident in VMEM.
            pl.BlockSpec((HIDDEN_SIZE, INPUT_SIZE), lambda i: (0, 0)),
            pl.BlockSpec((HIDDEN_SIZE, 1), lambda i: (0, 0)),
            pl.BlockSpec((OUTPUT_SIZE, HIDDEN_SIZE), lambda i: (0, 0)),
            pl.BlockSpec((OUTPUT_SIZE, 1), lambda i: (0, 0)),
        ],
        out_specs=pl.BlockSpec((OUTPUT_SIZE, tile_b), lambda i: (0, i)),
        compiler_params=pltpu.CompilerParams(
            # Batch tiles are independent -> shard across TCs on megacore (v7x).
            dimension_semantics=("parallel",),
        ),
        cost_estimate=cost,
    )(xT, w1.astype(jnp.float32), b1c, w2.astype(jnp.float32), b2c)

    # Back to the PyTorch (B, OUTPUT_SIZE) convention, dropping batch padding.
    return outT[:, :batch].T


def init_params(key):
    """PyTorch nn.Linear default init: U[-1/sqrt(fan_in), 1/sqrt(fan_in)], PyTorch layout."""
    k1, k2, k3, k4 = jax.random.split(key, 4)
    bound1 = 1.0 / jnp.sqrt(jnp.float32(INPUT_SIZE))
    bound2 = 1.0 / jnp.sqrt(jnp.float32(HIDDEN_SIZE))
    w1 = jax.random.uniform(k1, (HIDDEN_SIZE, INPUT_SIZE), jnp.float32, -bound1, bound1)
    b1 = jax.random.uniform(k2, (HIDDEN_SIZE,), jnp.float32, -bound1, bound1)
    w2 = jax.random.uniform(k3, (OUTPUT_SIZE, HIDDEN_SIZE), jnp.float32, -bound2, bound2)
    b2 = jax.random.uniform(k4, (OUTPUT_SIZE,), jnp.float32, -bound2, bound2)
    return w1, b1, w2, b2


if __name__ == "__main__":
    key = jax.random.PRNGKey(0)
    kx, kp = jax.random.split(key)

    batch = 8  # toy size; kernel tiles/pads batch to 128-lane multiples internally
    x = jax.random.normal(kx, (batch, INPUT_SIZE), dtype=jnp.float32)
    w1, b1, w2, b2 = init_params(kp)

    out = time_series_mlp_forward(x, w1, b1, w2, b2)
    out = jax.block_until_ready(out)

    # Pure-JAX reference (PyTorch semantics: x @ W1.T + b1, relu, @ W2.T + b2)
    ref = jnp.maximum(x @ w1.T + b1, 0.0) @ w2.T + b2
    assert out.shape == (batch, OUTPUT_SIZE)
    assert jnp.allclose(out, ref, atol=1e-5, rtol=1e-5)

    print("KERNEL_OK")
</pallas_src>

<mosaic_0001>
module attributes {stable_mosaic.version = 11 : i64} {
  func.func @mlp_kernel(%arg0: i32, %arg1: memref<10x128xf32, #tpu.memory_space<vmem>>, %arg2: memref<20x10xf32, #tpu.memory_space<vmem>>, %arg3: memref<20x1xf32, #tpu.memory_space<vmem>>, %arg4: memref<1x20xf32, #tpu.memory_space<vmem>>, %arg5: memref<1x1xf32, #tpu.memory_space<vmem>>, %arg6: memref<1x128xf32, #tpu.memory_space<vmem>>) attributes {dimension_semantics = [#tpu.dimension_semantics<parallel>], iteration_bounds = array<i64: 1>, scalar_prefetch = 0 : i64, scratch_operands = 0 : i64, tpu.core_type = #tpu.core_type<tc>, window_params = [{transform_indices = @transform_0, window_bounds = array<i64: 10, 128>}, {pipeline_mode = #tpu.pipeline_mode<synchronous>, transform_indices = @transform_1, window_bounds = array<i64: 20, 10>}, {pipeline_mode = #tpu.pipeline_mode<synchronous>, transform_indices = @transform_2, window_bounds = array<i64: 20, 1>}, {pipeline_mode = #tpu.pipeline_mode<synchronous>, transform_indices = @transform_3, window_bounds = array<i64: 1, 20>}, {pipeline_mode = #tpu.pipeline_mode<synchronous>, transform_indices = @transform_4, window_bounds = array<i64: 1, 1>}, {transform_indices = @transform_5, window_bounds = array<i64: 1, 128>}]} {
    %c0 = arith.constant 0 : index
    %c0_0 = arith.constant 0 : index
    %0 = vector.load %arg1[%c0, %c0_0] : memref<10x128xf32, #tpu.memory_space<vmem>>, vector<10x128xf32>
    %c0_1 = arith.constant 0 : index
    %c0_2 = arith.constant 0 : index
    %1 = vector.load %arg2[%c0_1, %c0_2] : memref<20x10xf32, #tpu.memory_space<vmem>>, vector<20x10xf32>
    %cst = arith.constant dense<0.000000e+00> : vector<20x128xf32>
    %2 = tpu.matmul %1, %0, %cst {dimension_numbers = #tpu.dot_dimension_numbers<[1], [0], [0], [1], [0, 0, 1, 1], [], []>} : vector<20x10xf32>, vector<10x128xf32>, vector<20x128xf32> -> vector<20x128xf32>
    %c0_3 = arith.constant 0 : index
    %c0_4 = arith.constant 0 : index
    %3 = vector.load %arg3[%c0_3, %c0_4] : memref<20x1xf32, #tpu.memory_space<vmem>>, vector<20x1xf32>
    %4 = vector.broadcast %3 : vector<20x1xf32> to vector<20x128xf32>
    %5 = arith.addf %2, %4 : vector<20x128xf32>
    %cst_5 = arith.constant 0.000000e+00 : f32
    %6 = vector.broadcast %cst_5 : f32 to vector<20x128xf32>
    %7 = arith.maximumf %5, %6 : vector<20x128xf32>
    %c0_6 = arith.constant 0 : index
    %c0_7 = arith.constant 0 : index
    %8 = vector.load %arg4[%c0_6, %c0_7] : memref<1x20xf32, #tpu.memory_space<vmem>>, vector<1x20xf32>
    %cst_8 = arith.constant dense<0.000000e+00> : vector<1x128xf32>
    %9 = tpu.matmul %8, %7, %cst_8 {dimension_numbers = #tpu.dot_dimension_numbers<[1], [0], [0], [1], [0, 0, 1, 1], [], []>} : vector<1x20xf32>, vector<20x128xf32>, vector<1x128xf32> -> vector<1x128xf32>
    %c0_9 = arith.constant 0 : index
    %c0_10 = arith.constant 0 : index
    %10 = vector.load %arg5[%c0_9, %c0_10] : memref<1x1xf32, #tpu.memory_space<vmem>>, vector<1x1xf32>
    %11 = vector.broadcast %10 : vector<1x1xf32> to vector<1x128xf32>
    %12 = arith.addf %9, %11 : vector<1x128xf32>
    %c0_11 = arith.constant 0 : index
    %c0_12 = arith.constant 0 : index
    %13 = vector.load %arg6[%c0_11, %c0_12] : memref<1x128xf32, #tpu.memory_space<vmem>>, vector<1x128xf32>
    tpu.vector_store %arg6[%c0_11, %c0_12], %12 {strides = array<i32>} : memref<1x128xf32, #tpu.memory_space<vmem>>, vector<1x128xf32>,
    return
  }
  func.func @transform_0(%arg0: i32) -> (i32, i32) {
    %c0_i32 = arith.constant 0 : i32
    %c0_i32_0 = arith.constant 0 : i32
    return %c0_i32, %arg0 : i32, i32
  }
  func.func @transform_1(%arg0: i32) -> (i32, i32) {
    %c0_i32 = arith.constant 0 : i32
    %c0_i32_0 = arith.constant 0 : i32
    %c0_i32_1 = arith.constant 0 : i32
    return %c0_i32, %c0_i32_0 : i32, i32
  }
  func.func @transform_2(%arg0: i32) -> (i32, i32) {
    %c0_i32 = arith.constant 0 : i32
    %c0_i32_0 = arith.constant 0 : i32
    %c0_i32_1 = arith.constant 0 : i32
    return %c0_i32, %c0_i32_0 : i32, i32
  }
  func.func @transform_3(%arg0: i32) -> (i32, i32) {
    %c0_i32 = arith.constant 0 : i32
    %c0_i32_0 = arith.constant 0 : i32
    %c0_i32_1 = arith.constant 0 : i32
    return %c0_i32, %c0_i32_0 : i32, i32
  }
  func.func @transform_4(%arg0: i32) -> (i32, i32) {
    %c0_i32 = arith.constant 0 : i32
    %c0_i32_0 = arith.constant 0 : i32
    %c0_i32_1 = arith.constant 0 : i32
    return %c0_i32, %c0_i32_0 : i32, i32
  }
  func.func @transform_5(%arg0: i32) -> (i32, i32) {
    %c0_i32 = arith.constant 0 : i32
    %c0_i32_0 = arith.constant 0 : i32
    return %c0_i32, %arg0 : i32, i32
  }
}

</mosaic_0001>

<bundles_post_ra>
// kernel: time_series_mlp_forward.1
= control target key start
LH: loop header
LB: loop body
LE: loop exit
PB: predicated region body
PF: predicated region fallthrough
CT: control target
= control target key end

     0   :  { %vm55_vm0 = vcmask 1041408   ;;  %v142_v2 = vmov 0   ;;  %vm45_vm1 = vcmask 80896   ;;  %vm100_vm2 = vcmask 1043456   ;;  %s209_s0 = inlined_call_operand.vmem [shape: f32[10,128], index: 0, kind: input, shape index: {}]   ;;  %s210_s1 = inlined_call_operand.vmem [shape: f32[20,10], index: 1, kind: input, shape index: {}]   ;;  %s211_s2 = inlined_call_operand.vmem [shape: f32[20,1], index: 2, kind: input, shape index: {}]   ;;  %s212_s4 = inlined_call_operand.<no memory space> [shape: f32[1,1], index: 4, kind: input, shape index: {}]   ;;  %s213_s3 = inlined_call_operand.vmem [shape: f32[1,20], index: 3, kind: input, shape index: {}]   ;;  %s214_s5 = inlined_call_operand.vmem [shape: f32[1,128], index: 5, kind: output, shape index: {}]  }
   0x1   :  { %v23_v0 = vld [vmem:[%s209_s0 + $0x8] sm:$0x3]  ;;  %v22_v1 = vld [vmem:[%s209_s0] sm:$0xff]  ;;  %140 = vset.pattern.permute.xlu0 %v142_v2  ;;  %141 = vset.pattern.permute.xlu1 %v142_v2  ;;  %v10_v3 = vstv %s212_s4  ;;  %v26_v5 = vld [vmem:[%s210_s1 + $0x10] sm:$0xf]  ;;  %vm96_vm3 = vcmask 162816  }
   0x2   :  { %135 = vmatpush.msk.msra.mxu2 %vm55_vm0, %v23_v0  ;;  %136 = vmatpush.msk.msra.mxu3 %vm55_vm0, %v23_v0  ;;  %v25_v4 = vld [vmem:[%s210_s1 + $0x8] sm:$0xff]  ;;  %v29_v6 = vld [vmem:[%s211_s2 + $0x10] sm:$0xf]  ;;  %v27_v7 = vld [vmem:[%s211_s2] sm:$0xff]  ;;  %11 = vst [vmem:[#allocation2] sm:$0x1] %v10_v3 }
   0x3   :  { %42 = vperm.xlu0 %140, %v29_v6   ;;  %129 = vmatpush.msk.msra.mxu0 %vm55_vm0, %v23_v0  ;;  %v24_v8 = vld [vmem:[%s210_s1] sm:$0xff]  ;;  %v28_v9 = vld [vmem:[%s211_s2 + $0x8] sm:$0xff] }
   0x4   :  { %137 = vmatpush.msra.mxu2 %v22_v1  ;;  %138 = vmatpush.msra.mxu3 %v22_v1  ;;  %v88_v23 = vld [vmem:[%s213_s3] sm:$0x1] }
   0x5   :  { %131 = vmatmul.msk.f32.vlgmr.msra.gmra.mxu2 %vm45_vm1, %v25_v4  ;;  %132 = vmatmul.msk.f32.vlgmr.msra.gmra.mxu3 %vm45_vm1, %v26_v5 }
   0x6   :  { %74 = vmatpush.msra.mxu0 %v22_v1  ;;  %32 = vperm.xlu1 %141, %v27_v7  }
   0x7   :  { %130 = vmatmul.msk.f32.vlgmr.msra.gmra.mxu0 %vm45_vm1, %v24_v8 }
   0x9   :  { %v89_v10 = vld [vmem:[#allocation2] sm:$0x1] }
   0xb   :  { %37 = vperm.xlu0 %140, %v28_v9  }
   0xe   :  { %92 = vperm.xlu1 %141, %v89_v10  }
  0x75   :  { %v43_v11 = vpop.permute.xlu0 %42 }
  0x78   :  { %v33_v14 = vpop.permute.xlu1 %32 }
  0x7d   :  { %v38_v13 = vpop.permute.xlu0 %37 }
  0x80   :  { %v93_v24 = vpop.permute.xlu1 %92 }
  0x81   :  { %v95_v25 = vperm.slane %v93_v24, 0 }
  0x84   :  { %v76_v12 = vpop.f32.mrf.mxu0 }
  0x85   :  { %v77_v19 = vadd.f32 %v76_v12, %v33_v14 }
  0x87   :  { %v85_v22 = vmax.f32 %v77_v19, 0.0 }
  0x88   :  { %v79_v15 = vpop.f32.mrf.mxu2  ;;  %v82_v16 = vpop.f32.mrf.mxu3 }
  0x89   :  { %v80_v17 = vadd.f32 %v79_v15, %v38_v13  ;;  %v83_v18 = vadd.f32 %v82_v16, %v43_v11 }
  0x8b   :  { %v87_v20 = vmax.f32 %v83_v18, 0.0  ;;  %v86_v21 = vmax.f32 %v80_v17, 0.0 }
  0x8d   :  { %133 = vmatpush.msk.msra.mxu1 %vm100_vm2, %v87_v20 }
  0x8f   :  { %118 = vmatpush.msra.mxu1 %v86_v21 }
  0x91   :  { %119 = vmatpush.msra.mxu1 %v85_v22 }
  0x92   :  { %134 = vmatmul.msk.f32.vlgmr.msra.gmra.mxu1 %vm96_vm3, %v88_v23 }
 0x10f   :  { %v121_v26 = vpop.f32.mrf.mxu1 }
 0x110   :  { %v122_v27 = vadd.f32 %v121_v26, %v95_v25 }
 0x112   :  { %124 = vst [vmem:[%s214_s5] sm:$0x1] %v122_v27 }

</bundles_post_ra>
